<compile_context>
chip_gen: v7x
topology: tpu7x:2x2x1
jax: 0.10.0
libtpu: 0.0.40
codegen_flags: <defaults>
</compile_context>

<pallas_src>
import functools

import jax
import jax.numpy as jnp
from jax import lax
from jax.experimental import pallas as pl
from jax.experimental.pallas import tpu as pltpu


def _deepconn_kernel(
    idx_ref,    # (F, TB)            int32  field-offset-adjusted indices (batch on lanes)
    tu_ref,     # (wd, TB)           bf16   user text, transposed
    ti_ref,     # (wd, TB)           bf16   item text, transposed
    emb_ref,    # (F*E, F*V)         f32    block-diagonal embedding table (transposed)
    wcu_ref,    # (ks*P, wd)         bf16   user conv center-tap, tap-major rows
    bcu_ref,    # (ks*P, 1)          f32
    wci_ref,    # (ks*P, wd)         bf16   item conv center-tap, tap-major rows
    bci_ref,    # (ks*P, 1)          f32
    wl_ref,     # (2*C, 2*P)         f32    block-diagonal fused linear
    bl_ref,     # (2*C, 1)           f32
    wfm_ref,    # (2*latent+1, 2*D)  f32    stacked [v.T | 0 ; 0 | (v*v).T ; fm_w | 0]
    fmb_ref,    # (1, 1)             f32    SMEM scalar
    out_ref,    # (1, TB)            f32    lane-dense output block
    *, F, V, ks, P, latent,
):
    TB = out_ref.shape[1]
    f32 = jnp.float32

    # ---- FeaturesEmbedding: stacked one-hots, ONE block-diagonal MXU gather ------------
    idx = idx_ref[...]                                                     # (F, TB)
    iota_v = lax.broadcasted_iota(jnp.int32, (V, TB), 0)
    oh = jnp.concatenate(
        [(iota_v == idx[f:f + 1, :]).astype(f32) for f in range(F)], axis=0)   # (F*V, TB)
    emb_feats = jnp.dot(emb_ref[...], oh, preferred_element_type=f32)           # (F*E, TB)

    # ---- per-branch CNN_1D: center-tap conv (L == 1) + ReLU + MaxPool2d((ks, 1)) -------
    def conv_branch(w_ref, b_ref, t_ref):
        c = jnp.dot(w_ref[...], t_ref[...], preferred_element_type=f32) + b_ref[...]
        c = jnp.maximum(c, 0.0)                         # (ks*P, TB), tap-major rows
        acc = c[0:P, :]
        for t in range(1, ks):                          # max over taps == MaxPool over
            acc = jnp.maximum(acc, c[t * P:(t + 1) * P, :])   # ks consecutive channels
        return acc                                      # (P, TB)

    pooled = jnp.concatenate([conv_branch(wcu_ref, bcu_ref, tu_ref),
                              conv_branch(wci_ref, bci_ref, ti_ref)], axis=0)   # (2P, TB)
    # Dropout(p=0.5): eval-mode identity.
    h = jnp.dot(wl_ref[...], pooled, preferred_element_type=f32) + bl_ref[...]  # (2C, TB)
    h = jnp.maximum(h, 0.0)                                                      # ReLU

    # ---- FactorizationMachine_v on z = [isbn_emb ; h_user ; h_item] --------------------
    # One stacked matmul computes v.T @ z, (v*v).T @ (z*z) and fm_w @ z together.
    z = jnp.concatenate([emb_feats, h], axis=0)                                  # (D, TB)
    zz = jnp.concatenate([z, z * z], axis=0)                                     # (2D, TB)
    r = jnp.dot(wfm_ref[...], zz, preferred_element_type=f32)                    # (2L+1, TB)
    s = r[0:latent, :]
    sq = r[latent:2 * latent, :]
    lin = r[2 * latent:2 * latent + 1, :] + fmb_ref[0, 0]                        # (1, TB)
    pair = jnp.sum(s * s - sq, axis=0, keepdims=True)                            # (1, TB)

    out_ref[...] = (lin + 0.5 * pair).astype(out_ref.dtype)                      # lane-dense


def _pick_batch_tile(B):
    # Largest lane tile (multiple of 128, <= 2048): per-grid-step overhead (~0.35 us)
    # dominates small tiles.  Capped so the grid keeps >= 2 steps when possible, so both
    # v7x TensorCores get work via the "parallel" batch axis.
    if B <= 128:
        return 128
    half = (B + 1) // 2
    return min(2048, ((half + 127) // 128) * 128)


def deepconn_pallas(user_isbn, user_text_ncl, item_text_ncl, p, cfg, *, use_bf16=True):
    field_dims = cfg["field_dims"]
    E, wd, out_dim = cfg["embed_dim"], cfg["word_dim"], cfg["out_dim"]
    ks, C, latent = cfg["kernel_size"], cfg["conv_1d_out_dim"], cfg["latent_dim"]
    assert ks % 2 == 1, "center-tap conv formulation requires an odd kernel_size"
    assert user_text_ncl.shape[-1] == 1 and item_text_ncl.shape[-1] == 1, \
        "_DeepCoNN forward only type-checks with a single conv output position (L == 1)"

    B = user_isbn.shape[0]
    F = len(field_dims)
    V = p["emb"].shape[0]
    P = out_dim // ks                       # MaxPool floor behaviour
    KP = ks * P
    D = F * E + 2 * C
    pad_tap = (ks - 1) // 2
    in_dt = jnp.bfloat16 if use_bf16 else jnp.float32
    # NOTE: P % 8 == 0 keeps the tap-major pooling slices on sublane boundaries (perf only).

    TB = _pick_batch_tile(B)
    G = pl.cdiv(B, TB)
    Bp = G * TB

    # ---- lane-major (feature-major) activations: batch on the 128-wide lane axis -------
    idx = (user_isbn.astype(jnp.int32) + p["offsets"][None, :].astype(jnp.int32)).T  # (F, B)
    idx = jnp.pad(idx, ((0, 0), (0, Bp - B)))          # padded lanes: idx=0 (valid row)
    tu = jnp.pad(user_text_ncl[:, :, 0].T.astype(in_dt), ((0, 0), (0, Bp - B)))      # (wd, Bp)
    ti = jnp.pad(item_text_ncl[:, :, 0].T.astype(in_dt), ((0, 0), (0, Bp - B)))      # (wd, Bp)

    # ---- fused / transposed weights (prepared once in XLA) -----------------------------
    def prep_conv(Wc, bc):
        wc_c = Wc[:KP, :, pad_tap]                                               # (P*ks, wd)
        wc_tm = wc_c.reshape(P, ks, wd).transpose(1, 0, 2).reshape(KP, wd)       # tap-major
        bc_tm = bc[:KP].reshape(P, ks).T.reshape(KP, 1)
        return wc_tm.astype(in_dt), bc_tm.astype(jnp.float32)

    wcu, bcu = prep_conv(p["u_Wc"], p["u_bc"])
    wci, bci = prep_conv(p["i_Wc"], p["i_bc"])

    emb_t = p["emb"].T.astype(jnp.float32)                                       # (E, V)
    emb_bd = jnp.zeros((F * E, F * V), jnp.float32)
    for f in range(F):
        emb_bd = emb_bd.at[f * E:(f + 1) * E, f * V:(f + 1) * V].set(emb_t)

    wl_bd = jnp.zeros((2 * C, 2 * P), jnp.float32)
    wl_bd = wl_bd.at[:C, :P].set(p["u_Wl"]).at[C:, P:].set(p["i_Wl"])
    bl_bd = jnp.concatenate([p["u_bl"], p["i_bl"]], axis=0).reshape(2 * C, 1).astype(jnp.float32)

    L = latent
    wfm = jnp.zeros((2 * L + 1, 2 * D), jnp.float32)
    wfm = wfm.at[0:L, 0:D].set(p["v"].T)                       # s  = v.T  @ z
    wfm = wfm.at[L:2 * L, D:2 * D].set((p["v"] * p["v"]).T)    # sq = v2.T @ (z*z)
    wfm = wfm.at[2 * L:2 * L + 1, 0:D].set(p["fm_w"])          # lin = fm_w @ z
    fmb = p["fm_b"].reshape(1, 1).astype(jnp.float32)

    kernel = functools.partial(_deepconn_kernel, F=F, V=V, ks=ks, P=P, latent=L)
    const = lambda i: (0, 0)
    # NOTE: if profiling shows exposed input DMA at large TB, bump the three streamed
    # in_specs to pipeline_mode=pl.Buffered(3).
    out = pl.pallas_call(
        kernel,
        out_shape=jax.ShapeDtypeStruct((1, Bp), jnp.float32),
        grid=(G,),
        in_specs=[
            pl.BlockSpec((F, TB), lambda i: (0, i)),                 # indices (streamed)
            pl.BlockSpec((wd, TB), lambda i: (0, i)),                # user text (streamed)
            pl.BlockSpec((wd, TB), lambda i: (0, i)),                # item text (streamed)
            pl.BlockSpec((F * E, F * V), const),                     # block-diag embedding
            pl.BlockSpec((KP, wd), const),                           # user conv weight
            pl.BlockSpec((KP, 1), const),                            # user conv bias
            pl.BlockSpec((KP, wd), const),                           # item conv weight
            pl.BlockSpec((KP, 1), const),                            # item conv bias
            pl.BlockSpec((2 * C, 2 * P), const),                     # fused linear weight
            pl.BlockSpec((2 * C, 1), const),                         # fused linear bias
            pl.BlockSpec((2 * L + 1, 2 * D), const),                 # stacked FM weight
            pl.BlockSpec(memory_space=pltpu.MemorySpace.SMEM),       # fm bias scalar
        ],
        out_specs=pl.BlockSpec((1, TB), lambda i: (0, i)),
        compiler_params=pltpu.CompilerParams(
            dimension_semantics=("parallel",),
            vmem_limit_bytes=32 * 1024 * 1024),
    )(idx, tu, ti, emb_bd, wcu, bcu, wci, bci, wl_bd, bl_bd, wfm, fmb)
    return out[0, :B]                                                # .squeeze(1)


def deepconn_reference(user_isbn, user_text_ncl, item_text_ncl, p, cfg, *,
                       conv_dtype=jnp.float32):
    """Pure-JAX reference mirroring the PyTorch forward (eval mode).

    `conv_dtype=jnp.bfloat16` quantizes the conv text/weight inputs exactly the way the
    kernel's bf16 path does (f32 accumulation), so any remaining kernel/reference delta
    is accumulation order only.
    """
    E, wd, out_dim = cfg["embed_dim"], cfg["word_dim"], cfg["out_dim"]
    ks, C = cfg["kernel_size"], cfg["conv_1d_out_dim"]
    B = user_isbn.shape[0]
    F = len(cfg["field_dims"])
    P = out_dim // ks
    pad = (ks - 1) // 2

    with jax.default_matmul_precision("highest"):
        idx = user_isbn + p["offsets"][None, :]
        isbn_feat = p["emb"][idx].reshape(B, F * E)

        def cnn(x_ncl, Wc, bc, Wl, bl):
            xp = jnp.pad(x_ncl, ((0, 0), (0, 0), (pad, pad)))
            xp = xp.astype(conv_dtype).astype(jnp.float32)
            Wc_q = Wc.astype(conv_dtype).astype(jnp.float32)
            conv = jnp.einsum('bck,ock->bo', xp, Wc_q) + bc              # L_out == 1
            conv = jnp.maximum(conv, 0.0)
            pooled = conv[:, :P * ks].reshape(B, P, ks).max(axis=-1)     # MaxPool2d((ks,1))
            h = pooled @ Wl.T + bl
            return jnp.maximum(h, 0.0)

        hu = cnn(user_text_ncl, p["u_Wc"], p["u_bc"], p["u_Wl"], p["u_bl"])
        hi = cnn(item_text_ncl, p["i_Wc"], p["i_bc"], p["i_Wl"], p["i_bl"])
        x = jnp.concatenate([isbn_feat, hu, hi], axis=1)

        lin = x @ p["fm_w"].T + p["fm_b"]
        s = x @ p["v"]
        sq = (x * x) @ (p["v"] * p["v"])
        pair = jnp.sum(s * s - sq, axis=1, keepdims=True)
        return (lin + 0.5 * pair)[:, 0]


if __name__ == "__main__":
    # ---- configuration (small, consistent with the module's __init__) ----
    cfg = dict(field_dims=(6, 10), embed_dim=8, word_dim=32, out_dim=24,
               kernel_size=3, conv_1d_out_dim=16, latent_dim=8)
    B = 4
    F = len(cfg["field_dims"])
    V = sum(cfg["field_dims"])
    E, wd, od = cfg["embed_dim"], cfg["word_dim"], cfg["out_dim"]
    ks, C, L = cfg["kernel_size"], cfg["conv_1d_out_dim"], cfg["latent_dim"]
    P = od // ks
    D = F * E + 2 * C

    offsets = [0]
    for d in cfg["field_dims"][:-1]:
        offsets.append(offsets[-1] + d)

    key = jax.random.PRNGKey(0)
    k = jax.random.split(key, 16)
    params = {
        "emb": jax.random.normal(k[0], (V, E), jnp.float32) * 0.1,
        "offsets": jnp.array(offsets, jnp.int32),
        "u_Wc": jax.random.normal(k[1], (od, wd, ks), jnp.float32) * 0.1,
        "u_bc": jax.random.normal(k[2], (od,), jnp.float32) * 0.1,
        "u_Wl": jax.random.normal(k[3], (C, P), jnp.float32) * 0.1,
        "u_bl": jax.random.normal(k[4], (C,), jnp.float32) * 0.1,
        "i_Wc": jax.random.normal(k[5], (od, wd, ks), jnp.float32) * 0.1,
        "i_bc": jax.random.normal(k[6], (od,), jnp.float32) * 0.1,
        "i_Wl": jax.random.normal(k[7], (C, P), jnp.float32) * 0.1,
        "i_bl": jax.random.normal(k[8], (C,), jnp.float32) * 0.1,
        "v": jax.random.uniform(k[9], (D, L), jnp.float32),
        "fm_w": jax.random.normal(k[10], (1, D), jnp.float32) * 0.1,
        "fm_b": jax.random.normal(k[11], (1,), jnp.float32) * 0.1,
    }

    # ---- inputs: x = (user_isbn_vector, user_text_vector, item_text_vector) ----
    raw = jax.random.randint(k[12], (B, F), 0, 10_000)
    user_isbn = (raw % jnp.array(cfg["field_dims"], jnp.int32)).astype(jnp.int32)  # (B, F)
    user_text = jax.random.normal(k[13], (B, wd, 1), jnp.float32)                  # NCL
    item_text = jax.random.normal(k[14], (B, wd, 1), jnp.float32)                  # NCL

    out = deepconn_pallas(user_isbn, user_text, item_text, params, cfg, use_bf16=True)
    out = jax.block_until_ready(out)

    # Precision-matched reference (bf16 text/conv-weight quantization, f32 elsewhere).
    ref = deepconn_reference(user_isbn, user_text, item_text, params, cfg,
                             conv_dtype=jnp.bfloat16)
    assert out.shape == (B,), out.shape
    assert jnp.allclose(out, ref, atol=1e-2, rtol=1e-2), (out, ref)

    print("KERNEL_OK")
</pallas_src>

<mosaic_0001>
module attributes {stable_mosaic.version = 11 : i64} {
  func.func @_deepconn_kernel(%arg0: i32, %arg1: memref<2x128xi32, #tpu.memory_space<vmem>>, %arg2: memref<32x128xbf16, #tpu.memory_space<vmem>>, %arg3: memref<32x128xbf16, #tpu.memory_space<vmem>>, %arg4: memref<16x32xf32, #tpu.memory_space<vmem>>, %arg5: memref<24x32xbf16, #tpu.memory_space<vmem>>, %arg6: memref<24x1xf32, #tpu.memory_space<vmem>>, %arg7: memref<24x32xbf16, #tpu.memory_space<vmem>>, %arg8: memref<24x1xf32, #tpu.memory_space<vmem>>, %arg9: memref<32x16xf32, #tpu.memory_space<vmem>>, %arg10: memref<32x1xf32, #tpu.memory_space<vmem>>, %arg11: memref<17x96xf32, #tpu.memory_space<vmem>>, %arg12: memref<1x1xf32, #tpu.memory_space<smem>>, %arg13: memref<1x128xf32, #tpu.memory_space<vmem>>) attributes {dimension_semantics = [#tpu.dimension_semantics<parallel>], iteration_bounds = array<i64: 1>, scalar_prefetch = 0 : i64, scratch_operands = 0 : i64, tpu.core_type = #tpu.core_type<tc>, window_params = [{transform_indices = @transform_0, window_bounds = array<i64: 2, 128>}, {transform_indices = @transform_1, window_bounds = array<i64: 32, 128>}, {transform_indices = @transform_2, window_bounds = array<i64: 32, 128>}, {pipeline_mode = #tpu.pipeline_mode<synchronous>, transform_indices = @transform_3, window_bounds = array<i64: 16, 32>}, {pipeline_mode = #tpu.pipeline_mode<synchronous>, transform_indices = @transform_4, window_bounds = array<i64: 24, 32>}, {pipeline_mode = #tpu.pipeline_mode<synchronous>, transform_indices = @transform_5, window_bounds = array<i64: 24, 1>}, {pipeline_mode = #tpu.pipeline_mode<synchronous>, transform_indices = @transform_6, window_bounds = array<i64: 24, 32>}, {pipeline_mode = #tpu.pipeline_mode<synchronous>, transform_indices = @transform_7, window_bounds = array<i64: 24, 1>}, {pipeline_mode = #tpu.pipeline_mode<synchronous>, transform_indices = @transform_8, window_bounds = array<i64: 32, 16>}, {pipeline_mode = #tpu.pipeline_mode<synchronous>, transform_indices = @transform_9, window_bounds = array<i64: 32, 1>}, {pipeline_mode = #tpu.pipeline_mode<synchronous>, transform_indices = @transform_10, window_bounds = array<i64: 17, 96>}, {transform_indices = @transform_11, window_bounds = array<i64: 1, 1>}, {transform_indices = @transform_12, window_bounds = array<i64: 1, 128>}]} {
    %c0 = arith.constant 0 : index
    %c0_0 = arith.constant 0 : index
    %0 = vector.load %arg1[%c0, %c0_0] : memref<2x128xi32, #tpu.memory_space<vmem>>, vector<2x128xi32>
    %1 = tpu.iota {dimensions = array<i32: 0>} : vector<16x128xi32>
    %2 = vector.extract_strided_slice %0 {offsets = [0, 0], sizes = [1, 128], strides = [1, 1]} : vector<2x128xi32> to vector<1x128xi32>
    %3 = vector.broadcast %2 : vector<1x128xi32> to vector<16x128xi32>
    %4 = arith.cmpi eq, %1, %3 : vector<16x128xi32>
    %5 = arith.extui %4 : vector<16x128xi1> to vector<16x128xi32>
    %6 = arith.sitofp %5 : vector<16x128xi32> to vector<16x128xf32>
    %7 = vector.extract_strided_slice %0 {offsets = [1, 0], sizes = [1, 128], strides = [1, 1]} : vector<2x128xi32> to vector<1x128xi32>
    %8 = vector.broadcast %7 : vector<1x128xi32> to vector<16x128xi32>
    %9 = arith.cmpi eq, %1, %8 : vector<16x128xi32>
    %10 = arith.extui %9 : vector<16x128xi1> to vector<16x128xi32>
    %11 = arith.sitofp %10 : vector<16x128xi32> to vector<16x128xf32>
    %12 = tpu.concatenate %6, %11 in 0 : vector<16x128xf32>, vector<16x128xf32> -> vector<32x128xf32>
    %c0_1 = arith.constant 0 : index
    %c0_2 = arith.constant 0 : index
    %13 = vector.load %arg4[%c0_1, %c0_2] : memref<16x32xf32, #tpu.memory_space<vmem>>, vector<16x32xf32>
    %cst = arith.constant dense<0.000000e+00> : vector<16x128xf32>
    %14 = tpu.matmul %13, %12, %cst {dimension_numbers = #tpu.dot_dimension_numbers<[1], [0], [0], [1], [0, 0, 1, 1], [], []>} : vector<16x32xf32>, vector<32x128xf32>, vector<16x128xf32> -> vector<16x128xf32>
    %c0_3 = arith.constant 0 : index
    %c0_4 = arith.constant 0 : index
    %15 = vector.load %arg5[%c0_3, %c0_4] : memref<24x32xbf16, #tpu.memory_space<vmem>>, vector<24x32xbf16>
    %c0_5 = arith.constant 0 : index
    %c0_6 = arith.constant 0 : index
    %16 = vector.load %arg2[%c0_5, %c0_6] : memref<32x128xbf16, #tpu.memory_space<vmem>>, vector<32x128xbf16>
    %cst_7 = arith.constant dense<0.000000e+00> : vector<24x128xf32>
    %17 = tpu.matmul %15, %16, %cst_7 {dimension_numbers = #tpu.dot_dimension_numbers<[1], [0], [0], [1], [0, 0, 1, 1], [], []>} : vector<24x32xbf16>, vector<32x128xbf16>, vector<24x128xf32> -> vector<24x128xf32>
    %c0_8 = arith.constant 0 : index
    %c0_9 = arith.constant 0 : index
    %18 = vector.load %arg6[%c0_8, %c0_9] : memref<24x1xf32, #tpu.memory_space<vmem>>, vector<24x1xf32>
    %19 = vector.broadcast %18 : vector<24x1xf32> to vector<24x128xf32>
    %20 = arith.addf %17, %19 : vector<24x128xf32>
    %cst_10 = arith.constant 0.000000e+00 : f32
    %21 = vector.broadcast %cst_10 : f32 to vector<24x128xf32>
    %22 = arith.maximumf %20, %21 : vector<24x128xf32>
    %23 = vector.extract_strided_slice %22 {offsets = [0, 0], sizes = [8, 128], strides = [1, 1]} : vector<24x128xf32> to vector<8x128xf32>
    %24 = vector.extract_strided_slice %22 {offsets = [8, 0], sizes = [8, 128], strides = [1, 1]} : vector<24x128xf32> to vector<8x128xf32>
    %25 = arith.maximumf %23, %24 : vector<8x128xf32>
    %26 = vector.extract_strided_slice %22 {offsets = [16, 0], sizes = [8, 128], strides = [1, 1]} : vector<24x128xf32> to vector<8x128xf32>
    %27 = arith.maximumf %25, %26 : vector<8x128xf32>
    %c0_11 = arith.constant 0 : index
    %c0_12 = arith.constant 0 : index
    %28 = vector.load %arg7[%c0_11, %c0_12] : memref<24x32xbf16, #tpu.memory_space<vmem>>, vector<24x32xbf16>
    %c0_13 = arith.constant 0 : index
    %c0_14 = arith.constant 0 : index
    %29 = vector.load %arg3[%c0_13, %c0_14] : memref<32x128xbf16, #tpu.memory_space<vmem>>, vector<32x128xbf16>
    %cst_15 = arith.constant dense<0.000000e+00> : vector<24x128xf32>
    %30 = tpu.matmul %28, %29, %cst_15 {dimension_numbers = #tpu.dot_dimension_numbers<[1], [0], [0], [1], [0, 0, 1, 1], [], []>} : vector<24x32xbf16>, vector<32x128xbf16>, vector<24x128xf32> -> vector<24x128xf32>
    %c0_16 = arith.constant 0 : index
    %c0_17 = arith.constant 0 : index
    %31 = vector.load %arg8[%c0_16, %c0_17] : memref<24x1xf32, #tpu.memory_space<vmem>>, vector<24x1xf32>
    %32 = vector.broadcast %31 : vector<24x1xf32> to vector<24x128xf32>
    %33 = arith.addf %30, %32 : vector<24x128xf32>
    %cst_18 = arith.constant 0.000000e+00 : f32
    %34 = vector.broadcast %cst_18 : f32 to vector<24x128xf32>
    %35 = arith.maximumf %33, %34 : vector<24x128xf32>
    %36 = vector.extract_strided_slice %35 {offsets = [0, 0], sizes = [8, 128], strides = [1, 1]} : vector<24x128xf32> to vector<8x128xf32>
    %37 = vector.extract_strided_slice %35 {offsets = [8, 0], sizes = [8, 128], strides = [1, 1]} : vector<24x128xf32> to vector<8x128xf32>
    %38 = arith.maximumf %36, %37 : vector<8x128xf32>
    %39 = vector.extract_strided_slice %35 {offsets = [16, 0], sizes = [8, 128], strides = [1, 1]} : vector<24x128xf32> to vector<8x128xf32>
    %40 = arith.maximumf %38, %39 : vector<8x128xf32>
    %41 = tpu.concatenate %27, %40 in 0 : vector<8x128xf32>, vector<8x128xf32> -> vector<16x128xf32>
    %c0_19 = arith.constant 0 : index
    %c0_20 = arith.constant 0 : index
    %42 = vector.load %arg9[%c0_19, %c0_20] : memref<32x16xf32, #tpu.memory_space<vmem>>, vector<32x16xf32>
    %cst_21 = arith.constant dense<0.000000e+00> : vector<32x128xf32>
    %43 = tpu.matmul %42, %41, %cst_21 {dimension_numbers = #tpu.dot_dimension_numbers<[1], [0], [0], [1], [0, 0, 1, 1], [], []>} : vector<32x16xf32>, vector<16x128xf32>, vector<32x128xf32> -> vector<32x128xf32>
    %c0_22 = arith.constant 0 : index
    %c0_23 = arith.constant 0 : index
    %44 = vector.load %arg10[%c0_22, %c0_23] : memref<32x1xf32, #tpu.memory_space<vmem>>, vector<32x1xf32>
    %45 = vector.broadcast %44 : vector<32x1xf32> to vector<32x128xf32>
    %46 = arith.addf %43, %45 : vector<32x128xf32>
    %cst_24 = arith.constant 0.000000e+00 : f32
    %47 = vector.broadcast %cst_24 : f32 to vector<32x128xf32>
    %48 = arith.maximumf %46, %47 : vector<32x128xf32>
    %49 = tpu.concatenate %14, %48 in 0 : vector<16x128xf32>, vector<32x128xf32> -> vector<48x128xf32>
    %50 = arith.mulf %49, %49 : vector<48x128xf32>
    %51 = tpu.concatenate %49, %50 in 0 : vector<48x128xf32>, vector<48x128xf32> -> vector<96x128xf32>
    %c0_25 = arith.constant 0 : index
    %c0_26 = arith.constant 0 : index
    %52 = vector.load %arg11[%c0_25, %c0_26] : memref<17x96xf32, #tpu.memory_space<vmem>>, vector<17x96xf32>
    %cst_27 = arith.constant dense<0.000000e+00> : vector<17x128xf32>
    %53 = tpu.matmul %52, %51, %cst_27 {dimension_numbers = #tpu.dot_dimension_numbers<[1], [0], [0], [1], [0, 0, 1, 1], [], []>} : vector<17x96xf32>, vector<96x128xf32>, vector<17x128xf32> -> vector<17x128xf32>
    %54 = vector.extract_strided_slice %53 {offsets = [0, 0], sizes = [8, 128], strides = [1, 1]} : vector<17x128xf32> to vector<8x128xf32>
    %55 = vector.extract_strided_slice %53 {offsets = [8, 0], sizes = [8, 128], strides = [1, 1]} : vector<17x128xf32> to vector<8x128xf32>
    %56 = vector.extract_strided_slice %53 {offsets = [16, 0], sizes = [1, 128], strides = [1, 1]} : vector<17x128xf32> to vector<1x128xf32>
    %c0_28 = arith.constant 0 : index
    %c0_29 = arith.constant 0 : index
    %57 = memref.load %arg12[%c0_28, %c0_29] : memref<1x1xf32, #tpu.memory_space<smem>>
    %58 = vector.broadcast %57 : f32 to vector<1x128xf32>
    %59 = arith.addf %56, %58 : vector<1x128xf32>
    %60 = arith.mulf %54, %54 : vector<8x128xf32>
    %61 = arith.subf %60, %55 : vector<8x128xf32>
    %cst_30 = arith.constant dense<0.000000e+00> : vector<128xf32>
    %62 = vector.multi_reduction <add>, %61, %cst_30 [0] : vector<8x128xf32> to vector<128xf32>
    %63 = vector.shape_cast %62 : vector<128xf32> to vector<1x128xf32>
    %cst_31 = arith.constant 5.000000e-01 : f32
    %64 = vector.broadcast %cst_31 : f32 to vector<1x128xf32>
    %65 = arith.mulf %64, %63 : vector<1x128xf32>
    %66 = arith.addf %59, %65 : vector<1x128xf32>
    %c0_32 = arith.constant 0 : index
    %c0_33 = arith.constant 0 : index
    %67 = vector.load %arg13[%c0_32, %c0_33] : memref<1x128xf32, #tpu.memory_space<vmem>>, vector<1x128xf32>
    tpu.vector_store %arg13[%c0_32, %c0_33], %66 {strides = array<i32>} : memref<1x128xf32, #tpu.memory_space<vmem>>, vector<1x128xf32>,
    return
  }
  func.func @transform_0(%arg0: i32) -> (i32, i32) {
    %c0_i32 = arith.constant 0 : i32
    %c0_i32_0 = arith.constant 0 : i32
    return %c0_i32, %arg0 : i32, i32
  }
  func.func @transform_1(%arg0: i32) -> (i32, i32) {
    %c0_i32 = arith.constant 0 : i32
    %c0_i32_0 = arith.constant 0 : i32
    return %c0_i32, %arg0 : i32, i32
  }
  func.func @transform_2(%arg0: i32) -> (i32, i32) {
    %c0_i32 = arith.constant 0 : i32
    %c0_i32_0 = arith.constant 0 : i32
    return %c0_i32, %arg0 : i32, i32
  }
  func.func @transform_3(%arg0: i32) -> (i32, i32) {
    %c0_i32 = arith.constant 0 : i32
    %c0_i32_0 = arith.constant 0 : i32
    %c0_i32_1 = arith.constant 0 : i32
    return %c0_i32, %c0_i32_0 : i32, i32
  }
  func.func @transform_4(%arg0: i32) -> (i32, i32) {
    %c0_i32 = arith.constant 0 : i32
    %c0_i32_0 = arith.constant 0 : i32
    %c0_i32_1 = arith.constant 0 : i32
    return %c0_i32, %c0_i32_0 : i32, i32
  }
  func.func @transform_5(%arg0: i32) -> (i32, i32) {
    %c0_i32 = arith.constant 0 : i32
    %c0_i32_0 = arith.constant 0 : i32
    %c0_i32_1 = arith.constant 0 : i32
    return %c0_i32, %c0_i32_0 : i32, i32
  }
  func.func @transform_6(%arg0: i32) -> (i32, i32) {
    %c0_i32 = arith.constant 0 : i32
    %c0_i32_0 = arith.constant 0 : i32
    %c0_i32_1 = arith.constant 0 : i32
    return %c0_i32, %c0_i32_0 : i32, i32
  }
  func.func @transform_7(%arg0: i32) -> (i32, i32) {
    %c0_i32 = arith.constant 0 : i32
    %c0_i32_0 = arith.constant 0 : i32
    %c0_i32_1 = arith.constant 0 : i32
    return %c0_i32, %c0_i32_0 : i32, i32
  }
  func.func @transform_8(%arg0: i32) -> (i32, i32) {
    %c0_i32 = arith.constant 0 : i32
    %c0_i32_0 = arith.constant 0 : i32
    %c0_i32_1 = arith.constant 0 : i32
    return %c0_i32, %c0_i32_0 : i32, i32
  }
  func.func @transform_9(%arg0: i32) -> (i32, i32) {
    %c0_i32 = arith.constant 0 : i32
    %c0_i32_0 = arith.constant 0 : i32
    %c0_i32_1 = arith.constant 0 : i32
    return %c0_i32, %c0_i32_0 : i32, i32
  }
  func.func @transform_10(%arg0: i32) -> (i32, i32) {
    %c0_i32 = arith.constant 0 : i32
    %c0_i32_0 = arith.constant 0 : i32
    %c0_i32_1 = arith.constant 0 : i32
    return %c0_i32, %c0_i32_0 : i32, i32
  }
  func.func @transform_11(%arg0: i32) -> (i32, i32) {
    %c0_i32 = arith.constant 0 : i32
    %c0_i32_0 = arith.constant 0 : i32
    %c0_i32_1 = arith.constant 0 : i32
    return %c0_i32, %c0_i32_0 : i32, i32
  }
  func.func @transform_12(%arg0: i32) -> (i32, i32) {
    %c0_i32 = arith.constant 0 : i32
    %c0_i32_0 = arith.constant 0 : i32
    return %c0_i32, %arg0 : i32, i32
  }
}

</mosaic_0001>

<bundles_post_ra>
// kernel: tpu_custom_call.1
= control target key start
LH: loop header
LB: loop body
LE: loop exit
PB: predicated region body
PF: predicated region fallthrough
CT: control target
= control target key end

     0   :  { %v45_v0 = vlaneseq  ;;  %vm70_vm0 = vcmask 261120   ;;  %v821_v3 = vmov 0   ;;  %v822_v12 = vmov 1.0|1.0   ;;  %s1019_s0 = inlined_call_operand.vmem [shape: s32[2,128], index: 0, kind: input, shape index: {}]   ;;  %s1020_s1 = inlined_call_operand.vmem [shape: bf16[32,128], index: 1, kind: input, shape index: {}]   ;;  %s1021_s2 = inlined_call_operand.vmem [shape: bf16[32,128], index: 2, kind: input, shape index: {}]   ;;  %s1022_s3 = inlined_call_operand.vmem [shape: f32[16,32], index: 3, kind: input, shape index: {}]   ;;  %s1023_s4 = inlined_call_operand.vmem [shape: bf16[24,32], index: 4, kind: input, shape index: {}]   ;;  %s1024_s5 = inlined_call_operand.vmem [shape: f32[24,1], index: 5, kind: input, shape index: {}]   ;;  %s1025_s6 = inlined_call_operand.vmem [shape: bf16[24,32], index: 6, kind: input, shape index: {}]   ;;  %s1026_s7 = inlined_call_operand.vmem [shape: f32[24,1], index: 7, kind: input, shape index: {}]   ;;  %s1027_s8 = inlined_call_operand.vmem [shape: f32[32,16], index: 8, kind: input, shape index: {}]   ;;  %s1028_s9 = inlined_call_operand.vmem [shape: f32[32,1], index: 9, kind: input, shape index: {}]   ;;  %s1029_s10 = inlined_call_operand.vmem [shape: f32[17,96], index: 10, kind: input, shape index: {}]   ;;  %s1030_s11 = inlined_call_operand.<no memory space> [shape: f32[1,1], index: 11, kind: input, shape index: {}]   ;;  %s1031_s12 = inlined_call_operand.hbm [shape: f32[1,128], index: 12, kind: output, shape index: {}]  }
   0x1   :  { %v68_v1 = vld [vmem:[%s1022_s3] sm:$0xff]  ;;  %788 = vset.pattern.permute.xlu1 %v821_v3  ;;  %787 = vset.pattern.permute.xlu0 %v821_v3  ;;  %v264_v13 = vld [vmem:[%s1026_s7 + $0x8] sm:$0xff] }
   0x2   :  { %689 = vmatprep.mubr.msk.f32.mxu1 %vm70_vm0, %v68_v1  ;;  %v46_v2 = vshrl.u32 %v45_v0, 7  ;;  %v44_v4 = vld [vmem:[%s1019_s0] sm:$0x3]  ;;  %v160_v15 = vld [vmem:[%s1024_s5 + $0x8] sm:$0xff] }
   0x3   :  { %v263_v10 = vld [vmem:[%s1026_s7] sm:$0xff] }
   0x4   :  { %v47_v5 = vadd.s32 8, %v46_v2  ;;  %v50_v6 = vsub.s32 0, %v46_v2  ;;  %v60_v7 = vsub.s32 1, %v46_v2  ;;  %v159_v11 = vld [vmem:[%s1024_s5] sm:$0xff]  ;;  %268 = vperm.xlu1 %788, %v263_v10  }
   0x5   :  { %164 = vperm.xlu0 %787, %v159_v11   ;;  %v789_v14 = vld [vmem:[%s1020_s1] sm:$0xff]  }
   0x6   :  { %v51_v8 = vrot.slane %v44_v4, %v50_v6  ;;  %v61_v9 = vrot.slane %v44_v4, %v60_v7 }
   0x8   :  { %vm52_vm1 = vcmp.eq.s32.totalorder %v46_v2, %v51_v8  ;;  %vm53_vm2 = vcmp.eq.s32.totalorder %v47_v5, %v51_v8  ;;  %vm62_vm3 = vcmp.eq.s32.totalorder %v46_v2, %v61_v9  ;;  %vm63_vm4 = vcmp.eq.s32.totalorder %v47_v5, %v61_v9 }
   0x9   :  { %vm751_vm5 = vmpackc.low %vm53_vm2, %vm52_vm1 }
   0xa   :  { %752 = vmatprep.subr.msk.bf16.mxu1 %vm751_vm5, %v822_v12  ;;  %vm755_vm6 = vmpackc.low %vm63_vm4, %vm62_vm3 }
   0xb   :  { %754 = vmatpush3.bf16.msk.msra.mxu1 %vm751_vm5, %v822_v12 }
   0xc   :  { %756 = vmatprep.subr.msk.bf16.mxu1 %vm755_vm6, %v822_v12 }
   0xd   :  { %18 = vsyncpa [#allocation4], 0  ;;  %273 = vperm.xlu1 %788, %v264_v13   ;;  %v69_v16 = vld [vmem:[%s1022_s3 + $0x8] sm:$0xff]  ;;  %v791_v17 = vld [vmem:[%s1023_s4] sm:$0xff]   ;;  %169 = vperm.xlu0 %787, %v160_v15   ;;  %v823_v30 = vmov 0.0|0.0   ;;  %vm388_vm7 = vcmask 130048  }
   0xe   :  { %v265_v18 = vld [vmem:[%s1026_s7 + $0x10] sm:$0xff]  ;;  %v790_v19 = vld [vmem:[%s1020_s1 + $0x8] sm:$0xff]   ;;  %v793_v22 = vld [vmem:[%s1021_s2] sm:$0xff]   ;;  %763 = vmatprep.subr.bf16.mxu0 %v823_v30  ;;  %vm824_vm8 = vmmov 0   ;;  %v825_v8 = vmov 0.0   ;;  %vm499_vm9 = vcmask 785408  }
   0xf   :  { %758 = vmatpush3.bf16.msk.msra.mxu1 %vm755_vm6, %v822_v12  ;;  %v161_v20 = vld [vmem:[%s1024_s5 + $0x10] sm:$0xff]  ;;  %v365_v21 = vld [vmem:[%s1028_s9 + $0x8] sm:$0xff]  ;;  %v364_v23 = vld [vmem:[%s1028_s9] sm:$0xff]  ;;  %742 = vmatprep.mubr.msk.f32.mxu0 %vm824_vm8, %v825_v8 }
  0x10   :  { %692 = vmatprep.subr.bf16.mxu1 %v789_v14  ;;  %v792_v24 = vld [vmem:[%s1023_s4 + $0x8] ss:$0 sps:$4 sm:$0xff]   ;;  %v795_v25 = vld [vmem:[%s1025_s6] sm:$0xff]   ;;  %v367_v26 = vld [vmem:[%s1028_s9 + $0x18] sm:$0xff] }
  0x11   :  { %278 = vperm.xlu1 %788, %v265_v18   ;;  %174 = vperm.xlu0 %787, %v161_v20   ;;  %v794_v27 = vld [vmem:[%s1021_s2 + $0x8] sm:$0xff]   ;;  %v366_v28 = vld [vmem:[%s1028_s9 + $0x10] sm:$0xff]  ;;  %v360_v31 = vld [vmem:[%s1027_s8] sm:$0xff] }
  0x12   :  { %690 = vmatmul.mubr.msk.f32.vlgmr.msra.gmra.mrb[0].mxu1 %vm70_vm0, %v69_v16  ;;  %v796_v29 = vld [vmem:[%s1025_s6 + $0x8] ss:$0 sps:$4 sm:$0xff]   ;;  %v362_v6 = vld [vmem:[%s1027_s8 + $0x10] sm:$0xff]  ;;  %v363_v7 = vld [vmem:[%s1027_s8 + $0x18] sm:$0xff] }
  0x13   :  { %693 = vmatpush3.bf16.msra.mxu1 %v789_v14  ;;  %696 = vmatprep.mubr.msk.bf16.mxu1 %vm70_vm0, %v791_v17  ;;  %v361_v5 = vld [vmem:[%s1027_s8 + $0x8] sm:$0xff] }
  0x14   :  { %694 = vmatprep.subr.bf16.mxu1 %v790_v19 }
  0x15   :  { %375 = vperm.xlu1 %788, %v365_v21   ;;  %370 = vperm.xlu0 %787, %v364_v23  }
  0x17   :  { %695 = vmatpush3.bf16.msra.mxu1 %v790_v19 }
  0x18   :  { %700 = vmatprep.subr.bf16.mxu1 %v793_v22 }
  0x19   :  { %385 = vperm.xlu1 %788, %v367_v26   ;;  %380 = vperm.xlu0 %787, %v366_v28  }
  0x1a   :  { %697 = vmatmul.mubr.msk.bf16.vlgmr.msra.gmra.mrb[4].mxu1 %vm70_vm0, %v792_v24 }
  0x1b   :  { %701 = vmatpush3.bf16.msra.mxu1 %v793_v22  ;;  %704 = vmatprep.mubr.msk.bf16.mxu1 %vm70_vm0, %v795_v25 }
  0x1c   :  { %702 = vmatprep.subr.bf16.mxu1 %v794_v27 }
  0x1f   :  { %703 = vmatpush3.bf16.msra.mxu1 %v794_v27 }
  0x22   :  { %705 = vmatmul.mubr.msk.bf16.vlgmr.msra.gmra.mrb[8].mxu1 %vm70_vm0, %v796_v29 }
  0x23   :  { %712 = vmatprep.mubr.msk.f32.mxu1 %vm388_vm7, %v360_v31 }
  0x83   :  { %v269_v40 = vpop.permute.xlu1 %268 }
  0x84   :  { %v165_v32 = vpop.permute.xlu0 %164 }
  0x8c   :  { %v170_v39 = vpop.permute.xlu0 %169  ;;  %v274_v49 = vpop.permute.xlu1 %273 }
  0x90   :  { %v175_v45 = vpop.permute.xlu0 %174  ;;  %v279_v59 = vpop.permute.xlu1 %278 }
  0x94   :  { %v376_v9 = vpop.permute.xlu1 %375  ;;  %v371_v10 = vpop.permute.xlu0 %370 }
  0x98   :  { %v386_v16 = vpop.permute.xlu1 %385  ;;  %v381_v19 = vpop.permute.xlu0 %380 }
  0xe5   :  { %v691_v33 = vpop.f32.mrb[0].mxu1 }
  0xe6   :  { %v966_v34 = vmul.f32 %v691_v33, %v691_v33  ;;  %v143_v35 = vpop.f32.mrb[1].mxu1 }
  0xe7   :  { %v968_v36 = vmul.f32 %v143_v35, %v143_v35  ;;  %v764_v37 = vpack.c.bf16 %v691_v33, %v143_v35  ;;  %v496_v35 = vld [vmem:[%s1029_s10] sm:$0xff] }
  0xe9   :  { %v773_v38 = vpack.c.bf16 %v966_v34, %v968_v36  ;;  %765 = vmatpush3.bf16.msra.mxu0 %v764_v37  ;;  %v497_v37 = vld [vmem:[%s1029_s10 + $0x8] sm:$0xff] }
  0xea   :  { %766 = vmatprep.subr.bf16.mxu0 %v823_v30 }
  0xed   :  { %v698_v41 = vpop.f32.mrb[4].mxu1 }
  0xee   :  { %v237_v42 = vpop.f32.mrb[5].mxu1  ;;  %v246_v47 = vadd.f32 %v698_v41, %v175_v45 }
  0xef   :  { %v238_v43 = vadd.f32 %v237_v42, %v165_v32  ;;  %v699_v44 = vpop.f32.mrb[6].mxu1 }
  0xf0   :  { %v240_v46 = vpop.f32.mrb[7].mxu1  ;;  %v253_v52 = vmax.f32 %v246_v47, 0.0 }
  0xf1   :  { %v241_v48 = vadd.f32 %v240_v46, %v170_v39  ;;  %v251_v50 = vmax.f32 %v238_v43, 0.0 }
  0xf3   :  { %v252_v51 = vmax.f32 %v241_v48, 0.0  ;;  %v590_v48 = vstv %s1030_s11 }
  0xf5   :  { %v254_v53 = vmax.f32 %v251_v50, %v252_v51  ;;  %v706_v54 = vpop.f32.mrb[8].mxu1 }
  0xf6   :  { %v341_v55 = vpop.f32.mrb[9].mxu1  ;;  %v350_v61 = vadd.f32 %v706_v54, %v279_v59 }
  0xf7   :  { %v255_v56 = vmax.f32 %v254_v53, %v253_v52  ;;  %v342_v57 = vadd.f32 %v341_v55, %v269_v40  ;;  %v707_v58 = vpop.f32.mrb[10].mxu1 }
  0xf8   :  { %v344_v60 = vpop.f32.mrb[11].mxu1  ;;  %v357_v1 = vmax.f32 %v350_v61, 0.0 }
  0xf9   :  { %v345_v62 = vadd.f32 %v344_v60, %v274_v49  ;;  %v355_v63 = vmax.f32 %v342_v57, 0.0 }
  0xfb   :  { %v356_v0 = vmax.f32 %v345_v62, 0.0 }
  0xfd   :  { %v358_v2 = vmax.f32 %v355_v63, %v356_v0 }
  0xff   :  { %v359_v3 = vmax.f32 %v358_v2, %v357_v1 }
 0x101   :  { %v759_v4 = vpack.c.bf16 %v359_v3, %v255_v56 }
 0x103   :  { %760 = vmatprep.subr.bf16.mxu1 %v759_v4 }
 0x104   :  { %762 = vmatpush3.bf16.msra.mxu1 %v759_v4 }
 0x107   :  { %713 = vmatmul.mubr.msk.f32.vlgmr.msra.gmra.mrb[2].mxu1 %vm388_vm7, %v361_v5 }
 0x108   :  { %715 = vmatprep.mubr.msk.f32.mxu1 %vm388_vm7, %v362_v6 }
 0x10b   :  { %716 = vmatmul.mubr.msk.f32.gmra.mrb[12].mxu1 %vm388_vm7, %v363_v7 }
 0x1da   :  { %v714_v11 = vpop.f32.mrb[2].mxu1 }
 0x1db   :  { %v473_v12 = vadd.f32 %v714_v11, %v376_v9  ;;  %v467_v13 = vpop.f32.mrb[3].mxu1 }
 0x1dc   :  { %v468_v14 = vadd.f32 %v467_v13, %v371_v10 }
 0x1dd   :  { %v487_v15 = vmax.f32 %v473_v12, 0.0 }
 0x1de   :  { %v486_v17 = vmax.f32 %v468_v14, 0.0  ;;  %v717_v18 = vpop.f32.mrb[12].mxu1 }
 0x1df   :  { %v493_v20 = vmul.f32 %v487_v15, %v487_v15  ;;  %v483_v21 = vadd.f32 %v717_v18, %v386_v16  ;;  %v477_v22 = vpop.f32.mrb[13].mxu1 }
 0x1e0   :  { %v492_v23 = vmul.f32 %v486_v17, %v486_v17  ;;  %v767_v24 = vpack.c.bf16 %v487_v15, %v486_v17  ;;  %v478_v25 = vadd.f32 %v477_v22, %v381_v19 }
 0x1e1   :  { %v489_v26 = vmax.f32 %v483_v21, 0.0 }
 0x1e2   :  { %v488_v27 = vmax.f32 %v478_v25, 0.0  ;;  %768 = vmatpush3.bf16.msra.mxu0 %v767_v24  ;;  %v776_v28 = vpack.c.bf16 %v493_v20, %v492_v23 }
 0x1e3   :  { %v495_v29 = vmul.f32 %v489_v26, %v489_v26  ;;  %769 = vmatprep.subr.bf16.mxu0 %v823_v30 }
 0x1e4   :  { %v494_v31 = vmul.f32 %v488_v27, %v488_v27  ;;  %v770_v32 = vpack.c.bf16 %v489_v26, %v488_v27 }
 0x1e6   :  { %771 = vmatpush3.bf16.msra.mxu0 %v770_v32  ;;  %v779_v33 = vpack.c.bf16 %v495_v29, %v494_v31 }
 0x1e7   :  { %772 = vmatprep.subr.bf16.mxu0 %v823_v30 }
 0x1ea   :  { %774 = vmatpush3.bf16.msra.mxu0 %v773_v38 }
 0x1eb   :  { %775 = vmatprep.subr.bf16.mxu0 %v823_v30 }
 0x1ee   :  { %777 = vmatpush3.bf16.msra.mxu0 %v776_v28 }
 0x1ef   :  { %778 = vmatprep.subr.bf16.mxu0 %v823_v30  ;;  %v498_v30 = vld [vmem:[%s1029_s10 + $0x10] sm:$0x1]  ;;  %s826_s10 = smov [#allocation3]  }
 0x1f0   :  { %s609_s5 = sshll.u32 %s826_s10, 4  ;;  %s610_s5 = int_to_ptr.vmem [resolvable:$true] %s609_s5 }
 0x1f1   :  { %s797_s0 = scalar_lea.vmem %s610_s5, 16  ;;  %s801_s29 = scalar_lea.vmem %s610_s5, 32 }
 0x1f2   :  { %780 = vmatpush3.bf16.msra.mxu0 %v779_v33  ;;  %p798_p0 = scmp.ne.s32.totalorder %s610_s5, %s797_s0  ;;  %p802_p1 = scmp.lt.s32.totalorder %s610_s5, %s610_s5 }
 0x1f3   :  { %p803_p2 = scmp.lt.s32.totalorder %s801_s29, %s797_s0 }
 0x1f5   :  { %743 = vmatmul.mubr.msk.f32.vlgmr.msra.gmra.mrb[0].mxu0 %vm499_vm9, %v496_v35  ;;  %p804_p3 = por %p803_p2, %p802_p1 }
 0x1f6   :  { %745 = vmatprep.mubr.msk.f32.mxu0 %vm824_vm8, %v825_v8 }
 0x1f7   :  { %p805_p4 = pnand %p804_p3, %p798_p0 }
 0x1f9   :  { %746 = vmatmul.mubr.msk.f32.gmra.mrb[2].mxu0 %vm499_vm9, %v497_v37 }
 0x1fa   :  { %748 = vmatprep.mubr.msk.f32.mxu0 %vm824_vm8, %v825_v8 }
 0x1fd   :  { %749 = vmatmul.mubr.msk.f32.gmra.mrb[4].mxu0 %vm499_vm9, %v498_v30 }
 0x2c8   :  { %v575_v34 = vpop.f32.mrb[0].mxu0 }
 0x2c9   :  { %v744_v36 = vpop.f32.mrb[1].mxu0  ;;  %v592_v38 = vmul.f32 %v575_v34, %v575_v34 }
 0x2cc   :  { %v580_v39 = vpop.f32.mrb[2].mxu0 }
 0x2cd   :  { %v593_v40 = vsub.f32 %v592_v38, %v580_v39  ;;  %v747_v41 = vpop.f32.mrb[3].mxu0 }
 0x2cf   :  { %v594_v42 = vrot.slane %v593_v40, 4 }
 0x2d0   :  { %v585_v43 = vpop.f32.mrb[4].mxu0 }
 0x2d1   :  { %v595_v44 = vadd.f32 %v594_v42, %v593_v40  ;;  %v750_v45 = vpop.f32.mrb[5].mxu0  ;;  %v591_v50 = vadd.f32 %v590_v48, %v585_v43 }
 0x2d3   :  { %v596_v46 = vrot.slane %v595_v44, 2 }
 0x2d5   :  { %v597_v47 = vadd.f32 %v596_v46, %v595_v44 }
 0x2d7   :  { %v598_v49 = vrot.slane %v597_v47, 1 }
 0x2d9   :  { %v599_v51 = vadd.f32 %v598_v49, %v597_v47 }
 0x2db   :  { %v600_v52 = vmul.f32 0.5, %v599_v51 }
 0x2dd   :  { %v601_v53 = vadd.f32 %v600_v52, %v591_v50 }
 0x2df   :  { %602 = vst [vmem:[#allocation3] sm:$0x1] %v601_v53 }
 0x2e0   :  { %808 = shalt.err (!%p805_p4)
}
 0x2e1   :  { %s809_s11 = scalar_lea.hbm %s1031_s12, 16 }
 0x2e2   :  { %p810_p5 = scmp.ne.s32.totalorder %s1031_s12, %s809_s11  ;;  %p813_p6 = scmp.lt.u32.totalorder %s809_s11, %s1031_s12 }
 0x2e4   :  { %p815_p7 = pnand %p813_p6, %p810_p5 }
 0x2e6   :  { %818 = shalt.err (!%p815_p7)
}
 0x2e7   :  { %612 = dma.vmem_to_hbm [thread:$0]  %s610_s5, 16, %s1031_s12, [#allocation4]  }
 0x2e8   :  { %819 = dma.done.wait [#allocation4], 16  }
 0x2e9   :  { %820 = vsyncadd [#allocation4], 4294967280 }
 0x2ea   :  { %616 = vsyncpa [#allocation4], 1 }

</bundles_post_ra>
